<compile_context>
chip_gen: v7x
topology: tpu7x:2x2x1
jax: 0.10.0
libtpu: 0.0.40
codegen_flags: <defaults>
</compile_context>

<pallas_src>
import functools

import jax
import jax.numpy as jnp
from jax.experimental import pallas as pl
from jax.experimental.pallas import tpu as pltpu


def _round_up(x, m):
    return ((x + m - 1) // m) * m


def _cdiv(a, b):
    return (a + b - 1) // b


def _vmem_capacity_bytes():
    """Physical VMEM of the current chip; conservative 64 MiB if unknown."""
    try:
        return int(pltpu.get_tpu_info().vmem_capacity_bytes)
    except Exception:
        return 64 << 20  # v7x per-TC VMEM (smallest generation)


def _fused_mlp_kernel(*refs, n_hidden, activation, residual, mxu_dtype):
    """refs = (x_ref, w0, b0, ..., w_{n-1}, b_{n-1}, w_out, b_out, o_ref).

    One row-tile of x is chained through every layer entirely in VMEM (weights
    are resident: constant block index).  Matmuls run with bf16 operands on
    the MXU with f32 accumulation; bias-add / activation / residual in f32.
    """
    x_ref = refs[0]
    o_ref = refs[-1]
    wb = refs[1:-1]

    x32 = x_ref[...].astype(jnp.float32)
    h32 = x32
    for layer in range(n_hidden):
        w = wb[2 * layer][...]                  # mxu_dtype, hidden dims padded
        b = wb[2 * layer + 1][...]              # f32 (1, N), broadcasts
        a = jnp.dot(h32.astype(mxu_dtype), w,
                    preferred_element_type=jnp.float32) + b
        h32 = jnp.maximum(a, 0.0) if activation == "relu" else jnp.tanh(a)

    if residual:
        # PyTorch MLP adds the residual AFTER the hidden stack, BEFORE `out`.
        pad = h32.shape[1] - x32.shape[1]
        xr = x32
        if pad > 0:  # padded hidden lanes hit zero rows of w_out -> inert
            xr = jnp.concatenate(
                [xr, jnp.zeros((xr.shape[0], pad), jnp.float32)], axis=-1)
        h32 = h32 + xr

    w_out = wb[2 * n_hidden][...]
    b_out = wb[2 * n_hidden + 1][...]
    y = jnp.dot(h32.astype(mxu_dtype), w_out,
                preferred_element_type=jnp.float32) + b_out
    o_ref[...] = y.astype(o_ref.dtype)


def _pad_params(params, mxu_dtype=jnp.bfloat16, feat_align=128):
    """Pad hidden feature dims to `feat_align`, cast weights to the MXU dtype.

    Layer-0 K (=dim_in) and the output layer's N (=dim_out) are left unpadded:
    they touch HBM-resident activations/outputs directly, and whole-array
    BlockSpecs make any shape legal.  Only the on-chip hidden dims need to be
    lane-dense.  Biases stay f32 (bias-add/activation run on the VPU in f32).
    NOTE: on v6e/v7x, feat_align=256 can help when strongly compute-bound.
    """
    fc = []
    for li, (w, b) in enumerate(params["fc"]):
        k, n = w.shape
        kp = k if li == 0 else _round_up(k, feat_align)
        np_ = _round_up(n, feat_align)
        wp = jnp.pad(w, ((0, kp - k), (0, np_ - n))).astype(mxu_dtype)
        bp = jnp.pad(b.reshape(1, -1), ((0, 0), (0, np_ - n))).astype(jnp.float32)
        fc.append((wp, bp))

    w, b = params["out"]
    k, n = w.shape
    kp = k if not params["fc"] else _round_up(k, feat_align)
    wp = jnp.pad(w, ((0, kp - k), (0, 0))).astype(mxu_dtype)   # N kept unpadded
    bp = b.reshape(1, -1).astype(jnp.float32)
    return {"fc": fc, "out": (wp, bp)}


def _choose_tm(M, max_feat, vmem_capacity):
    g = 16                                  # bf16 packs (16,128); also /8 f32
    m16 = _round_up(max(M, g), g)
    # Aim for >=2 grid steps whenever possible so the 'parallel' axis can
    # shard across v7x's two TensorCores (single-TC v5e/v6e unaffected).
    tm = min(512, max(g, _round_up(_cdiv(m16, 2), g)))
    # Smaller row tile on 64 MiB-VMEM parts (v7x) when feature dims are large.
    if vmem_capacity <= (64 << 20) and max_feat >= 4096:
        tm = min(tm, 256)
    return tm


def fused_mlp_pallas(x2d, padded_params, *, activation="relu", residual=False,
                     mxu_dtype=jnp.bfloat16, tm=None):
    """x2d: [M, dim_in] (unpadded) -> [M, dim_out] (unpadded), one kernel."""
    M, dim_in = x2d.shape
    dim_out = padded_params["out"][0].shape[1]

    wb = []
    for (w, b) in padded_params["fc"]:
        wb.extend([w, b])
    wb.extend(padded_params["out"])
    n_hidden = len(padded_params["fc"])

    max_feat = max([dim_in, dim_out]
                   + [w.shape[1] for (w, _) in padded_params["fc"]])
    vmem_cap = _vmem_capacity_bytes()

    if tm is None:
        tm = _choose_tm(M, max_feat, vmem_cap)
    mp = _round_up(M, tm)
    if mp != M:
        x2d = jnp.pad(x2d, ((0, mp - M), (0, 0)))  # rows only, features untouched

    kernel = functools.partial(
        _fused_mlp_kernel, n_hidden=n_hidden, activation=activation,
        residual=residual, mxu_dtype=mxu_dtype)

    weight_bytes = sum(a.size * a.dtype.itemsize for a in wb)
    itm = x2d.dtype.itemsize

    def run(single_buffer_weights):
        def wspec(shape):
            if single_buffer_weights:
                # Constant block index -> one resident copy suffices.
                return pl.BlockSpec(shape, lambda i: (0, 0),
                                    pipeline_mode=pl.Buffered(1))
            return pl.BlockSpec(shape, lambda i: (0, 0))

        in_specs = [pl.BlockSpec((tm, dim_in), lambda i: (i, 0))]
        in_specs += [wspec(a.shape) for a in wb]
        out_specs = pl.BlockSpec((tm, dim_out), lambda i: (i, 0))

        # VMEM budget: resident weights (x1 single-buffered, x2 otherwise) +
        # double-buffered I/O row tiles + f32 intermediates headroom, capped
        # at ~85% of physical VMEM (leaves compiler-internal scratch room).
        wfac = 1 if single_buffer_weights else 2
        vmem_limit = int(
            wfac * weight_bytes
            + 2 * tm * dim_in * itm          # double-buffered input tile
            + 2 * tm * dim_out * itm         # double-buffered output tile
            + 4 * tm * max_feat * 4          # f32 intermediates headroom
            + (8 << 20))
        vmem_limit = min(max(vmem_limit, 16 << 20), int(0.85 * vmem_cap))

        return pl.pallas_call(
            kernel,
            out_shape=jax.ShapeDtypeStruct((mp, dim_out), x2d.dtype),
            grid=(mp // tm,),
            in_specs=in_specs,
            out_specs=out_specs,
            compiler_params=pltpu.CompilerParams(
                dimension_semantics=("parallel",),   # independent batch rows
                vmem_limit_bytes=vmem_limit,
            ),
        )(x2d, *wb)

    # TODO(synk): if padded weights exceed the resident VMEM budget, add a
    # K-grid axis + f32 VMEM accumulator per layer instead of whole-array
    # weight blocks (threshold ~2x lower on v7x than v5e/v6e).
    try:
        out = run(True)
    except Exception:
        # Older jax without Buffered(1) single-buffering support.
        out = run(False)
    return out[:M]


def elementwise_mlp_forward(params, x, activation="relu", residual=False,
                            x_mask=None, mxu_dtype=jnp.bfloat16):
    """ElementwiseMLP.forward: x is [batch, seq, dim_in], MLP per position."""
    assert activation in ("relu", "tanh")
    # TODO(synk): masked_fill with a non-None x_mask is not implemented.
    assert x_mask is None
    dim_in = x.shape[-1]
    dim_out = params["out"][0].shape[1]
    if residual:
        # Residual only makes sense when dim_in == dim_hidden (as in PyTorch).
        assert params["fc"] and params["fc"][0][0].shape[1] == dim_in

    padded = _pad_params(params, mxu_dtype=mxu_dtype)
    lead_shape = x.shape[:-1]
    x2d = x.reshape(-1, dim_in)                 # no feature-dim HBM padding
    y2d = fused_mlp_pallas(x2d, padded, activation=activation,
                           residual=residual, mxu_dtype=mxu_dtype)
    return y2d.reshape(*lead_shape, dim_out)


def init_mlp_params(key, dim_in, dim_hidden, dim_out, n_hidden,
                    dtype=jnp.float32):
    """Mimics PyTorch nn.Linear default init (U[-1/sqrt(fan_in), +]).

    Weights stored as [in_features, out_features], bias as [out_features].
    """
    params = {"fc": [], "out": None}
    in_dim = dim_in
    for _ in range(n_hidden):
        key, kw, kb = jax.random.split(key, 3)
        bound = 1.0 / float(in_dim) ** 0.5
        w = jax.random.uniform(kw, (in_dim, dim_hidden), dtype,
                               minval=-bound, maxval=bound)
        b = jax.random.uniform(kb, (dim_hidden,), dtype,
                               minval=-bound, maxval=bound)
        params["fc"].append((w, b))
        in_dim = dim_hidden
    key, kw, kb = jax.random.split(key, 3)
    out_in = dim_hidden if n_hidden > 0 else dim_in
    bound = 1.0 / float(out_in) ** 0.5
    w = jax.random.uniform(kw, (out_in, dim_out), dtype,
                           minval=-bound, maxval=bound)
    b = jax.random.uniform(kb, (dim_out,), dtype,
                           minval=-bound, maxval=bound)
    params["out"] = (w, b)
    return params


if __name__ == "__main__":
    # ElementwiseMLP implies [batch, seq, features] inputs.
    batch, seq, dim_in, dim_hidden, dim_out, n_hidden = 2, 8, 32, 64, 16, 2

    key = jax.random.PRNGKey(0)
    key, kx = jax.random.split(key)
    x = jax.random.normal(kx, (batch, seq, dim_in), dtype=jnp.float32)

    params = init_mlp_params(key, dim_in, dim_hidden, dim_out, n_hidden)

    y = elementwise_mlp_forward(params, x, activation="relu", residual=False)
    y = jax.block_until_ready(y)
    assert y.shape == (batch, seq, dim_out)

    # Precision-matched reference (bf16 MXU operands, f32 accumulation,
    # f32 bias-add/activation) -- mirrors the kernel's numerics.
    h = x.reshape(-1, dim_in)
    for (w, b) in params["fc"]:
        a = jnp.dot(h.astype(jnp.bfloat16), w.astype(jnp.bfloat16),
                    preferred_element_type=jnp.float32) + b
        h = jnp.maximum(a, 0.0)
    ref_bf16 = (jnp.dot(h.astype(jnp.bfloat16),
                        params["out"][0].astype(jnp.bfloat16),
                        preferred_element_type=jnp.float32)
                + params["out"][1]).reshape(batch, seq, dim_out)

    # Pure-f32 reference (looser tolerance because the kernel uses bf16 MXU
    # operands with f32 accumulation).
    h = x.reshape(-1, dim_in)
    for (w, b) in params["fc"]:
        h = jnp.maximum(h @ w + b, 0.0)
    ref_f32 = (h @ params["out"][0] + params["out"][1]).reshape(
        batch, seq, dim_out)

    err_b = float(jnp.max(jnp.abs(y - ref_bf16)))
    err_f = float(jnp.max(jnp.abs(y - ref_f32)))
    assert jnp.allclose(y, ref_bf16, atol=5e-3, rtol=5e-3), err_b
    assert jnp.allclose(y, ref_f32, atol=5e-2, rtol=5e-2), err_f

    print("KERNEL_OK")
</pallas_src>

<mosaic_0001>
module attributes {stable_mosaic.version = 11 : i64} {
  func.func @_fused_mlp_kernel(%arg0: i32, %arg1: memref<16x32xf32, #tpu.memory_space<vmem>>, %arg2: memref<32x128xbf16, #tpu.memory_space<vmem>>, %arg3: memref<1x128xf32, #tpu.memory_space<vmem>>, %arg4: memref<128x128xbf16, #tpu.memory_space<vmem>>, %arg5: memref<1x128xf32, #tpu.memory_space<vmem>>, %arg6: memref<128x16xbf16, #tpu.memory_space<vmem>>, %arg7: memref<1x16xf32, #tpu.memory_space<vmem>>, %arg8: memref<16x16xf32, #tpu.memory_space<vmem>>) attributes {dimension_semantics = [#tpu.dimension_semantics<parallel>], iteration_bounds = array<i64: 1>, scalar_prefetch = 0 : i64, scratch_operands = 0 : i64, tpu.core_type = #tpu.core_type<tc>, window_params = [{transform_indices = @transform_0, window_bounds = array<i64: 16, 32>}, {pipeline_mode = #tpu.pipeline_mode<synchronous>, transform_indices = @transform_1, window_bounds = array<i64: 32, 128>}, {pipeline_mode = #tpu.pipeline_mode<synchronous>, transform_indices = @transform_2, window_bounds = array<i64: 1, 128>}, {pipeline_mode = #tpu.pipeline_mode<synchronous>, transform_indices = @transform_3, window_bounds = array<i64: 128, 128>}, {pipeline_mode = #tpu.pipeline_mode<synchronous>, transform_indices = @transform_4, window_bounds = array<i64: 1, 128>}, {pipeline_mode = #tpu.pipeline_mode<synchronous>, transform_indices = @transform_5, window_bounds = array<i64: 128, 16>}, {pipeline_mode = #tpu.pipeline_mode<synchronous>, transform_indices = @transform_6, window_bounds = array<i64: 1, 16>}, {transform_indices = @transform_7, window_bounds = array<i64: 16, 16>}]} {
    %c0 = arith.constant 0 : index
    %c0_0 = arith.constant 0 : index
    %0 = vector.load %arg1[%c0, %c0_0] : memref<16x32xf32, #tpu.memory_space<vmem>>, vector<16x32xf32>
    %c0_1 = arith.constant 0 : index
    %c0_2 = arith.constant 0 : index
    %1 = vector.load %arg2[%c0_1, %c0_2] : memref<32x128xbf16, #tpu.memory_space<vmem>>, vector<32x128xbf16>
    %c0_3 = arith.constant 0 : index
    %c0_4 = arith.constant 0 : index
    %2 = vector.load %arg3[%c0_3, %c0_4] : memref<1x128xf32, #tpu.memory_space<vmem>>, vector<1x128xf32>
    %3 = arith.truncf %0 : vector<16x32xf32> to vector<16x32xbf16>
    %cst = arith.constant dense<0.000000e+00> : vector<16x128xf32>
    %4 = tpu.matmul %3, %1, %cst {dimension_numbers = #tpu.dot_dimension_numbers<[1], [0], [0], [1], [0, 0, 1, 1], [], []>} : vector<16x32xbf16>, vector<32x128xbf16>, vector<16x128xf32> -> vector<16x128xf32>
    %5 = vector.broadcast %2 : vector<1x128xf32> to vector<16x128xf32>
    %6 = arith.addf %4, %5 : vector<16x128xf32>
    %cst_5 = arith.constant 0.000000e+00 : f32
    %7 = vector.broadcast %cst_5 : f32 to vector<16x128xf32>
    %8 = arith.maximumf %6, %7 : vector<16x128xf32>
    %c0_6 = arith.constant 0 : index
    %c0_7 = arith.constant 0 : index
    %9 = vector.load %arg4[%c0_6, %c0_7] : memref<128x128xbf16, #tpu.memory_space<vmem>>, vector<128x128xbf16>
    %c0_8 = arith.constant 0 : index
    %c0_9 = arith.constant 0 : index
    %10 = vector.load %arg5[%c0_8, %c0_9] : memref<1x128xf32, #tpu.memory_space<vmem>>, vector<1x128xf32>
    %11 = arith.truncf %8 : vector<16x128xf32> to vector<16x128xbf16>
    %cst_10 = arith.constant dense<0.000000e+00> : vector<16x128xf32>
    %12 = tpu.matmul %11, %9, %cst_10 {dimension_numbers = #tpu.dot_dimension_numbers<[1], [0], [0], [1], [0, 0, 1, 1], [], []>} : vector<16x128xbf16>, vector<128x128xbf16>, vector<16x128xf32> -> vector<16x128xf32>
    %13 = vector.broadcast %10 : vector<1x128xf32> to vector<16x128xf32>
    %14 = arith.addf %12, %13 : vector<16x128xf32>
    %cst_11 = arith.constant 0.000000e+00 : f32
    %15 = vector.broadcast %cst_11 : f32 to vector<16x128xf32>
    %16 = arith.maximumf %14, %15 : vector<16x128xf32>
    %c0_12 = arith.constant 0 : index
    %c0_13 = arith.constant 0 : index
    %17 = vector.load %arg6[%c0_12, %c0_13] : memref<128x16xbf16, #tpu.memory_space<vmem>>, vector<128x16xbf16>
    %c0_14 = arith.constant 0 : index
    %c0_15 = arith.constant 0 : index
    %18 = vector.load %arg7[%c0_14, %c0_15] : memref<1x16xf32, #tpu.memory_space<vmem>>, vector<1x16xf32>
    %19 = arith.truncf %16 : vector<16x128xf32> to vector<16x128xbf16>
    %cst_16 = arith.constant dense<0.000000e+00> : vector<16x16xf32>
    %20 = tpu.matmul %19, %17, %cst_16 {dimension_numbers = #tpu.dot_dimension_numbers<[1], [0], [0], [1], [0, 0, 1, 1], [], []>} : vector<16x128xbf16>, vector<128x16xbf16>, vector<16x16xf32> -> vector<16x16xf32>
    %21 = vector.broadcast %18 : vector<1x16xf32> to vector<16x16xf32>
    %22 = arith.addf %20, %21 : vector<16x16xf32>
    %c0_17 = arith.constant 0 : index
    %c0_18 = arith.constant 0 : index
    %23 = vector.load %arg8[%c0_17, %c0_18] : memref<16x16xf32, #tpu.memory_space<vmem>>, vector<16x16xf32>
    tpu.vector_store %arg8[%c0_17, %c0_18], %22 {strides = array<i32>} : memref<16x16xf32, #tpu.memory_space<vmem>>, vector<16x16xf32>,
    return
  }
  func.func @transform_0(%arg0: i32) -> (i32, i32) {
    %c0_i32 = arith.constant 0 : i32
    %c0_i32_0 = arith.constant 0 : i32
    return %arg0, %c0_i32 : i32, i32
  }
  func.func @transform_1(%arg0: i32) -> (i32, i32) {
    %c0_i32 = arith.constant 0 : i32
    %c0_i32_0 = arith.constant 0 : i32
    %c0_i32_1 = arith.constant 0 : i32
    return %c0_i32, %c0_i32_0 : i32, i32
  }
  func.func @transform_2(%arg0: i32) -> (i32, i32) {
    %c0_i32 = arith.constant 0 : i32
    %c0_i32_0 = arith.constant 0 : i32
    %c0_i32_1 = arith.constant 0 : i32
    return %c0_i32, %c0_i32_0 : i32, i32
  }
  func.func @transform_3(%arg0: i32) -> (i32, i32) {
    %c0_i32 = arith.constant 0 : i32
    %c0_i32_0 = arith.constant 0 : i32
    %c0_i32_1 = arith.constant 0 : i32
    return %c0_i32, %c0_i32_0 : i32, i32
  }
  func.func @transform_4(%arg0: i32) -> (i32, i32) {
    %c0_i32 = arith.constant 0 : i32
    %c0_i32_0 = arith.constant 0 : i32
    %c0_i32_1 = arith.constant 0 : i32
    return %c0_i32, %c0_i32_0 : i32, i32
  }
  func.func @transform_5(%arg0: i32) -> (i32, i32) {
    %c0_i32 = arith.constant 0 : i32
    %c0_i32_0 = arith.constant 0 : i32
    %c0_i32_1 = arith.constant 0 : i32
    return %c0_i32, %c0_i32_0 : i32, i32
  }
  func.func @transform_6(%arg0: i32) -> (i32, i32) {
    %c0_i32 = arith.constant 0 : i32
    %c0_i32_0 = arith.constant 0 : i32
    %c0_i32_1 = arith.constant 0 : i32
    return %c0_i32, %c0_i32_0 : i32, i32
  }
  func.func @transform_7(%arg0: i32) -> (i32, i32) {
    %c0_i32 = arith.constant 0 : i32
    %c0_i32_0 = arith.constant 0 : i32
    return %arg0, %c0_i32 : i32, i32
  }
}

module attributes {stable_mosaic.version = 11 : i64} {
  func.func @_fused_mlp_kernel(%arg0: i32, %arg1: memref<16x32xf32, #tpu.memory_space<vmem>>, %arg2: memref<32x128xbf16, #tpu.memory_space<vmem>>, %arg3: memref<1x128xf32, #tpu.memory_space<vmem>>, %arg4: memref<128x128xbf16, #tpu.memory_space<vmem>>, %arg5: memref<1x128xf32, #tpu.memory_space<vmem>>, %arg6: memref<128x16xbf16, #tpu.memory_space<vmem>>, %arg7: memref<1x16xf32, #tpu.memory_space<vmem>>, %arg8: memref<16x16xf32, #tpu.memory_space<vmem>>) attributes {dimension_semantics = [#tpu.dimension_semantics<parallel>], iteration_bounds = array<i64: 1>, scalar_prefetch = 0 : i64, scratch_operands = 0 : i64, tpu.core_type = #tpu.core_type<tc>, window_params = [{transform_indices = @transform_0, window_bounds = array<i64: 16, 32>}, {pipeline_mode = #tpu.pipeline_mode<synchronous>, transform_indices = @transform_1, window_bounds = array<i64: 32, 128>}, {pipeline_mode = #tpu.pipeline_mode<synchronous>, transform_indices = @transform_2, window_bounds = array<i64: 1, 128>}, {pipeline_mode = #tpu.pipeline_mode<synchronous>, transform_indices = @transform_3, window_bounds = array<i64: 128, 128>}, {pipeline_mode = #tpu.pipeline_mode<synchronous>, transform_indices = @transform_4, window_bounds = array<i64: 1, 128>}, {pipeline_mode = #tpu.pipeline_mode<synchronous>, transform_indices = @transform_5, window_bounds = array<i64: 128, 16>}, {pipeline_mode = #tpu.pipeline_mode<synchronous>, transform_indices = @transform_6, window_bounds = array<i64: 1, 16>}, {transform_indices = @transform_7, window_bounds = array<i64: 16, 16>}]} {
    %c0 = arith.constant 0 : index
    %c0_0 = arith.constant 0 : index
    %0 = vector.load %arg1[%c0, %c0_0] : memref<16x32xf32, #tpu.memory_space<vmem>>, vector<16x32xf32>
    %c0_1 = arith.constant 0 : index
    %c0_2 = arith.constant 0 : index
    %1 = vector.load %arg2[%c0_1, %c0_2] : memref<32x128xbf16, #tpu.memory_space<vmem>>, vector<32x128xbf16>
    %c0_3 = arith.constant 0 : index
    %c0_4 = arith.constant 0 : index
    %2 = vector.load %arg3[%c0_3, %c0_4] : memref<1x128xf32, #tpu.memory_space<vmem>>, vector<1x128xf32>
    %3 = arith.truncf %0 : vector<16x32xf32> to vector<16x32xbf16>
    %cst = arith.constant dense<0.000000e+00> : vector<16x128xf32>
    %4 = tpu.matmul %3, %1, %cst {dimension_numbers = #tpu.dot_dimension_numbers<[1], [0], [0], [1], [0, 0, 1, 1], [], []>} : vector<16x32xbf16>, vector<32x128xbf16>, vector<16x128xf32> -> vector<16x128xf32>
    %5 = vector.broadcast %2 : vector<1x128xf32> to vector<16x128xf32>
    %6 = arith.addf %4, %5 : vector<16x128xf32>
    %cst_5 = arith.constant 0.000000e+00 : f32
    %7 = vector.broadcast %cst_5 : f32 to vector<16x128xf32>
    %8 = arith.maximumf %6, %7 : vector<16x128xf32>
    %c0_6 = arith.constant 0 : index
    %c0_7 = arith.constant 0 : index
    %9 = vector.load %arg4[%c0_6, %c0_7] : memref<128x128xbf16, #tpu.memory_space<vmem>>, vector<128x128xbf16>
    %c0_8 = arith.constant 0 : index
    %c0_9 = arith.constant 0 : index
    %10 = vector.load %arg5[%c0_8, %c0_9] : memref<1x128xf32, #tpu.memory_space<vmem>>, vector<1x128xf32>
    %11 = arith.truncf %8 : vector<16x128xf32> to vector<16x128xbf16>
    %cst_10 = arith.constant dense<0.000000e+00> : vector<16x128xf32>
    %12 = tpu.matmul %11, %9, %cst_10 {dimension_numbers = #tpu.dot_dimension_numbers<[1], [0], [0], [1], [0, 0, 1, 1], [], []>} : vector<16x128xbf16>, vector<128x128xbf16>, vector<16x128xf32> -> vector<16x128xf32>
    %13 = vector.broadcast %10 : vector<1x128xf32> to vector<16x128xf32>
    %14 = arith.addf %12, %13 : vector<16x128xf32>
    %cst_11 = arith.constant 0.000000e+00 : f32
    %15 = vector.broadcast %cst_11 : f32 to vector<16x128xf32>
    %16 = arith.maximumf %14, %15 : vector<16x128xf32>
    %c0_12 = arith.constant 0 : index
    %c0_13 = arith.constant 0 : index
    %17 = vector.load %arg6[%c0_12, %c0_13] : memref<128x16xbf16, #tpu.memory_space<vmem>>, vector<128x16xbf16>
    %c0_14 = arith.constant 0 : index
    %c0_15 = arith.constant 0 : index
    %18 = vector.load %arg7[%c0_14, %c0_15] : memref<1x16xf32, #tpu.memory_space<vmem>>, vector<1x16xf32>
    %19 = arith.truncf %16 : vector<16x128xf32> to vector<16x128xbf16>
    %cst_16 = arith.constant dense<0.000000e+00> : vector<16x16xf32>
    %20 = tpu.matmul %19, %17, %cst_16 {dimension_numbers = #tpu.dot_dimension_numbers<[1], [0], [0], [1], [0, 0, 1, 1], [], []>} : vector<16x128xbf16>, vector<128x16xbf16>, vector<16x16xf32> -> vector<16x16xf32>
    %21 = vector.broadcast %18 : vector<1x16xf32> to vector<16x16xf32>
    %22 = arith.addf %20, %21 : vector<16x16xf32>
    %c0_17 = arith.constant 0 : index
    %c0_18 = arith.constant 0 : index
    %23 = vector.load %arg8[%c0_17, %c0_18] : memref<16x16xf32, #tpu.memory_space<vmem>>, vector<16x16xf32>
    tpu.vector_store %arg8[%c0_17, %c0_18], %22 {strides = array<i32>} : memref<16x16xf32, #tpu.memory_space<vmem>>, vector<16x16xf32>,
    return
  }
  func.func @transform_0(%arg0: i32) -> (i32, i32) {
    %c0_i32 = arith.constant 0 : i32
    %c0_i32_0 = arith.constant 0 : i32
    return %arg0, %c0_i32 : i32, i32
  }
  func.func @transform_1(%arg0: i32) -> (i32, i32) {
    %c0_i32 = arith.constant 0 : i32
    %c0_i32_0 = arith.constant 0 : i32
    %c0_i32_1 = arith.constant 0 : i32
    return %c0_i32, %c0_i32_0 : i32, i32
  }
  func.func @transform_2(%arg0: i32) -> (i32, i32) {
    %c0_i32 = arith.constant 0 : i32
    %c0_i32_0 = arith.constant 0 : i32
    %c0_i32_1 = arith.constant 0 : i32
    return %c0_i32, %c0_i32_0 : i32, i32
  }
  func.func @transform_3(%arg0: i32) -> (i32, i32) {
    %c0_i32 = arith.constant 0 : i32
    %c0_i32_0 = arith.constant 0 : i32
    %c0_i32_1 = arith.constant 0 : i32
    return %c0_i32, %c0_i32_0 : i32, i32
  }
  func.func @transform_4(%arg0: i32) -> (i32, i32) {
    %c0_i32 = arith.constant 0 : i32
    %c0_i32_0 = arith.constant 0 : i32
    %c0_i32_1 = arith.constant 0 : i32
    return %c0_i32, %c0_i32_0 : i32, i32
  }
  func.func @transform_5(%arg0: i32) -> (i32, i32) {
    %c0_i32 = arith.constant 0 : i32
    %c0_i32_0 = arith.constant 0 : i32
    %c0_i32_1 = arith.constant 0 : i32
    return %c0_i32, %c0_i32_0 : i32, i32
  }
  func.func @transform_6(%arg0: i32) -> (i32, i32) {
    %c0_i32 = arith.constant 0 : i32
    %c0_i32_0 = arith.constant 0 : i32
    %c0_i32_1 = arith.constant 0 : i32
    return %c0_i32, %c0_i32_0 : i32, i32
  }
  func.func @transform_7(%arg0: i32) -> (i32, i32) {
    %c0_i32 = arith.constant 0 : i32
    %c0_i32_0 = arith.constant 0 : i32
    return %arg0, %c0_i32 : i32, i32
  }
}

</mosaic_0001>

<bundles_post_ra>
// kernel: tpu_custom_call.1
= control target key start
LH: loop header
LB: loop body
LE: loop exit
PB: predicated region body
PF: predicated region fallthrough
CT: control target
= control target key end

     0   :  { %12 = vsyncpa [#allocation3], 0  ;;  %s687_s0 = inlined_call_operand.vmem [shape: f32[16,32], index: 0, kind: input, shape index: {}]   ;;  %s688_s1 = inlined_call_operand.hbm [shape: bf16[32,128], index: 1, kind: input, shape index: {}]   ;;  %s689_s2 = inlined_call_operand.vmem [shape: f32[1,128], index: 2, kind: input, shape index: {}]   ;;  %s690_s3 = inlined_call_operand.vmem [shape: bf16[128,128], index: 3, kind: input, shape index: {}]   ;;  %s691_s4 = inlined_call_operand.vmem [shape: f32[1,128], index: 4, kind: input, shape index: {}]   ;;  %s692_s5 = inlined_call_operand.vmem [shape: bf16[128,16], index: 5, kind: input, shape index: {}]   ;;  %s693_s6 = inlined_call_operand.vmem [shape: f32[1,16], index: 6, kind: input, shape index: {}]   ;;  %s694_s7 = inlined_call_operand.hbm [shape: f32[16,16], index: 7, kind: output, shape index: {}]  }
   0x1   :  { %13 = vsyncpa [#allocation4], 0  ;;  %s528_s24 = smov [#allocation2]   ;;  %s480_s28 = scalar_lea.hbm %s688_s1, 256 }
   0x2   :  { %s21_s25 = sshll.u32 %s528_s24, 4  ;;  %p481_p0 = scmp.ne.s32.totalorder %s688_s1, %s480_s28  ;;  %s22_s25 = int_to_ptr.vmem [resolvable:$true] %s21_s25 }
   0x3   :  { %p484_p1 = scmp.lt.u32.totalorder %s480_s28, %s688_s1 }
   0x5   :  { %p486_p2 = pnand %p484_p1, %p481_p0 }
   0x7   :  { %489 = shalt.err (!%p486_p2)
}
   0x8   :  { %s490_s10 = scalar_lea.vmem %s22_s25, 256  ;;  %p495_p4 = scmp.lt.s32.totalorder %s22_s25, %s22_s25 }
   0x9   :  { %p491_p3 = scmp.ne.s32.totalorder %s22_s25, %s490_s10  ;;  %p496_p5 = scmp.lt.s32.totalorder %s490_s10, %s490_s10 }
   0xb   :  { %p497_p6 = por %p496_p5, %p495_p4 }
   0xd   :  { %p498_p7 = pnand %p497_p6, %p491_p3 }
   0xf   :  { %501 = shalt.err (!%p498_p7)
}
  0x10   :  { %s529_s11 = smov 64   ;;  %s530_s12 = smov 4  }
  0x11   :  { %27 = dma.hbm_to_vmem [thread:$0]  %s688_s1, 256, %s22_s25, [#allocation3], %s529_s11, %s529_s11, %s530_s12  }
  0x12   :  { %524 = dma.done.wait [#allocation3], 256  }
  0x13   :  { %525 = vsyncadd [#allocation3], 4294967040  ;;  %v531_v0 = vmov 0.0   ;;  %vm532_vm0 = vmmov 0   ;;  %v462_v1 = vld [vmem:[#allocation2] sm:$0xff]   ;;  %v463_v2 = vld [vmem:[#allocation2 + $0x8] sm:$0xff]  }
  0x14   :  { %406 = vmatprep.subr.bf16.mxu0 %v531_v0  ;;  %410 = vmatprep.mubr.msk.bf16.mxu0 %vm532_vm0, %v531_v0  ;;  %v42_v3 = vld [vmem:[%s687_s0] sm:$0xff]  ;;  %v43_v4 = vld [vmem:[%s687_s0 + $0x8] sm:$0xff]  ;;  %vm68_vm1 = vcmask 261120   ;;  %v466_v8 = vld [vmem:[%s690_s3 + $0x10] sm:$0xff]   ;;  %vm343_vm2 = vcmask 130048  }
  0x15   :  { %414 = vmatprep.subr.bf16.mxu1 %v531_v0  ;;  %430 = vmatprep.mubr.msk.bf16.mxu1 %vm532_vm0, %v531_v0  ;;  %v464_v5 = vld [vmem:[%s690_s3] sm:$0xff]   ;;  %v49_v6 = vpack.c.bf16 %v43_v4, %v42_v3  ;;  %v465_v7 = vld [vmem:[%s690_s3 + $0x8] sm:$0xff]   ;;  %v467_v9 = vld [vmem:[%s690_s3 + $0x18] sm:$0xff]  }
  0x16   :  { %407 = vmatpush3.bf16.msra.mxu0 %v462_v1  ;;  %415 = vmatpush3.bf16.msra.mxu1 %v464_v5  ;;  %v468_v10 = vld [vmem:[%s690_s3 + $0x20] sm:$0xff]   ;;  %v469_v11 = vld [vmem:[%s690_s3 + $0x28] sm:$0xff]   ;;  %v470_v12 = vld [vmem:[%s690_s3 + $0x30] sm:$0xff]  }
  0x17   :  { %408 = vmatprep.subr.bf16.mxu0 %v531_v0  ;;  %416 = vmatprep.subr.bf16.mxu1 %v531_v0  ;;  %v471_v13 = vld [vmem:[%s690_s3 + $0x38] sm:$0xff]   ;;  %v472_v14 = vld [vmem:[%s692_s5] sm:$0xff]   ;;  %v473_v15 = vld [vmem:[%s692_s5 + $0x8] sm:$0xff]  }
  0x18   :  { %v474_v16 = vld [vmem:[%s692_s5 + $0x10] sm:$0xff]   ;;  %v475_v17 = vld [vmem:[%s692_s5 + $0x18] sm:$0xff]   ;;  %v476_v18 = vld [vmem:[%s692_s5 + $0x20] sm:$0xff]  }
  0x19   :  { %v477_v19 = vld [vmem:[%s692_s5 + $0x28] sm:$0xff]   ;;  %v363_v20 = vld [vmem:[%s689_s2] ss:$0 sm:$0xff]  ;;  %v478_v30 = vld [vmem:[%s692_s5 + $0x30] sm:$0xff]  }
  0x1a   :  { %409 = vmatpush3.bf16.msra.mxu0 %v463_v2  ;;  %417 = vmatpush3.bf16.msra.mxu1 %v465_v7  ;;  %v479_v31 = vld [vmem:[%s692_s5 + $0x38] sm:$0xff]   ;;  %v367_v32 = vld [vmem:[%s691_s4] ss:$0 sm:$0xff]  ;;  %s533_s5 = smov [#allocation5]  }
  0x1b   :  { %434 = vmatprep.subr.bf16.mxu0 %v531_v0  ;;  %418 = vmatprep.subr.bf16.mxu1 %v531_v0  ;;  %v376_v42 = vld [vmem:[%s693_s6] ss:$0 sm:$0xff]  ;;  %s351_s28 = sshll.u32 %s533_s5, 4  ;;  %s352_s28 = int_to_ptr.vmem [resolvable:$true] %s351_s28 }
  0x1c   :  { %s502_s4 = scalar_lea.vmem %s352_s28, 256  ;;  %p507_p9 = scmp.lt.s32.totalorder %s352_s28, %s352_s28 }
  0x1d   :  { %411 = vmatmul.mubr.msk.bf16.vlgmr.msra.gmra.mrb[0].mxu0 %vm68_vm1, %v49_v6  ;;  %p503_p8 = scmp.ne.s32.totalorder %s352_s28, %s502_s4  ;;  %p508_p10 = scmp.lt.s32.totalorder %s502_s4, %s502_s4 }
  0x1e   :  { %450 = vmatprep.mubr.msk.bf16.mxu0 %vm532_vm0, %v531_v0  ;;  %419 = vmatpush3.bf16.msra.mxu1 %v466_v8 }
  0x1f   :  { %420 = vmatprep.subr.bf16.mxu1 %v531_v0  ;;  %435 = vmatpush3.bf16.msra.mxu0 %v472_v14  ;;  %p509_p11 = por %p508_p10, %p507_p9 }
  0x20   :  { %436 = vmatprep.subr.bf16.mxu0 %v531_v0 }
  0x21   :  { %p510_p12 = pnand %p509_p11, %p503_p8 }
  0x22   :  { %421 = vmatpush3.bf16.msra.mxu1 %v467_v9 }
  0x23   :  { %422 = vmatprep.subr.bf16.mxu1 %v531_v0  ;;  %437 = vmatpush3.bf16.msra.mxu0 %v473_v15 }
  0x24   :  { %438 = vmatprep.subr.bf16.mxu0 %v531_v0 }
  0x26   :  { %423 = vmatpush3.bf16.msra.mxu1 %v468_v10 }
  0x27   :  { %424 = vmatprep.subr.bf16.mxu1 %v531_v0  ;;  %439 = vmatpush3.bf16.msra.mxu0 %v474_v16 }
  0x28   :  { %440 = vmatprep.subr.bf16.mxu0 %v531_v0 }
  0x2a   :  { %425 = vmatpush3.bf16.msra.mxu1 %v469_v11 }
  0x2b   :  { %426 = vmatprep.subr.bf16.mxu1 %v531_v0  ;;  %441 = vmatpush3.bf16.msra.mxu0 %v475_v17 }
  0x2c   :  { %442 = vmatprep.subr.bf16.mxu0 %v531_v0 }
  0x2e   :  { %427 = vmatpush3.bf16.msra.mxu1 %v470_v12 }
  0x2f   :  { %428 = vmatprep.subr.bf16.mxu1 %v531_v0  ;;  %443 = vmatpush3.bf16.msra.mxu0 %v476_v18 }
  0x30   :  { %444 = vmatprep.subr.bf16.mxu0 %v531_v0 }
  0x32   :  { %429 = vmatpush3.bf16.msra.mxu1 %v471_v13 }
  0x33   :  { %445 = vmatpush3.bf16.msra.mxu0 %v477_v19 }
  0x34   :  { %446 = vmatprep.subr.bf16.mxu0 %v531_v0 }
  0x37   :  { %447 = vmatpush3.bf16.msra.mxu0 %v478_v30 }
  0x38   :  { %448 = vmatprep.subr.bf16.mxu0 %v531_v0 }
  0x3b   :  { %449 = vmatpush3.bf16.msra.mxu0 %v479_v31 }
  0xf0   :  { %v106_v21 = vpop.f32.mrb[0].mxu0 }
  0xf1   :  { %v107_v22 = vadd.f32 %v363_v20, %v106_v21  ;;  %v412_v23 = vpop.f32.mrb[1].mxu0 }
  0xf2   :  { %v109_v24 = vpop.f32.mrb[2].mxu0 }
  0xf3   :  { %v110_v25 = vadd.f32 %v363_v20, %v109_v24  ;;  %v413_v26 = vpop.f32.mrb[3].mxu0  ;;  %v113_v27 = vmax.f32 %v107_v22, 0.0 }
  0xf5   :  { %v114_v28 = vmax.f32 %v110_v25, 0.0 }
  0xf7   :  { %v132_v29 = vpack.c.bf16 %v114_v28, %v113_v27 }
  0xf9   :  { %431 = vmatmul.mubr.bf16.vlgmr.msra.gmra.mrb[0].mxu1 %v132_v29 }
 0x1cc   :  { %v221_v33 = vpop.f32.mrb[0].mxu1 }
 0x1cd   :  { %v222_v34 = vadd.f32 %v367_v32, %v221_v33  ;;  %v432_v35 = vpop.f32.mrb[1].mxu1 }
 0x1ce   :  { %v224_v36 = vpop.f32.mrb[2].mxu1 }
 0x1cf   :  { %v225_v37 = vadd.f32 %v367_v32, %v224_v36  ;;  %v433_v38 = vpop.f32.mrb[3].mxu1  ;;  %v228_v39 = vmax.f32 %v222_v34, 0.0 }
 0x1d1   :  { %v229_v40 = vmax.f32 %v225_v37, 0.0 }
 0x1d3   :  { %v247_v41 = vpack.c.bf16 %v229_v40, %v228_v39 }
 0x1d5   :  { %451 = vmatmul.mubr.bf16.vlgmr.msra.gmra.mrb[4].mxu0 %v247_v41 }
 0x2a8   :  { %v336_v43 = vpop.f32.mrb[4].mxu0 }
 0x2a9   :  { %v337_v44 = vadd.f32 %v376_v42, %v336_v43  ;;  %v452_v45 = vpop.f32.mrb[5].mxu0 }
 0x2aa   :  { %v339_v46 = vpop.f32.mrb[6].mxu0 }
 0x2ab   :  { %344 = vst.msk [vmem:[#allocation5] sm:$0xff] %vm343_vm2, %v337_v44  ;;  %v340_v47 = vadd.f32 %v376_v42, %v339_v46  ;;  %v453_v48 = vpop.f32.mrb[7].mxu0 }
 0x2ad   :  { %345 = vst.msk [vmem:[#allocation5 + $0x8] sm:$0xff] %vm343_vm2, %v340_v47 }
 0x2ae   :  { %513 = shalt.err (!%p510_p12)
}
 0x2af   :  { %s514_s30 = scalar_lea.hbm %s694_s7, 256 }
 0x2b0   :  { %p515_p13 = scmp.ne.s32.totalorder %s694_s7, %s514_s30  ;;  %p518_p0 = scmp.lt.u32.totalorder %s514_s30, %s694_s7 }
 0x2b2   :  { %p520_p1 = pnand %p518_p0, %p515_p13 }
 0x2b4   :  { %523 = shalt.err (!%p520_p1)
}
 0x2b5   :  { %s534_s12 = smov 128   ;;  %s535_s13 = smov 8  }
 0x2b6   :  { %357 = dma.vmem_to_hbm [thread:$0]  %s352_s28, 256, %s694_s7, [#allocation4], %s534_s12, %s534_s12, %s535_s13  }
 0x2b7   :  { %526 = dma.done.wait [#allocation4], 256  }
 0x2b8   :  { %527 = vsyncadd [#allocation4], 4294967040 }
 0x2b9   :  { %361 = vsyncpa [#allocation3], 1 }
 0x2ba   :  { %362 = vsyncpa [#allocation4], 1 }

// kernel: tpu_custom_call.1
= control target key start
LH: loop header
LB: loop body
LE: loop exit
PB: predicated region body
PF: predicated region fallthrough
CT: control target
= control target key end

     0   :  { %12 = vsyncpa [#allocation3], 0  ;;  %s687_s0 = inlined_call_operand.vmem [shape: f32[16,32], index: 0, kind: input, shape index: {}]   ;;  %s688_s1 = inlined_call_operand.hbm [shape: bf16[32,128], index: 1, kind: input, shape index: {}]   ;;  %s689_s2 = inlined_call_operand.vmem [shape: f32[1,128], index: 2, kind: input, shape index: {}]   ;;  %s690_s3 = inlined_call_operand.vmem [shape: bf16[128,128], index: 3, kind: input, shape index: {}]   ;;  %s691_s4 = inlined_call_operand.vmem [shape: f32[1,128], index: 4, kind: input, shape index: {}]   ;;  %s692_s5 = inlined_call_operand.vmem [shape: bf16[128,16], index: 5, kind: input, shape index: {}]   ;;  %s693_s6 = inlined_call_operand.vmem [shape: f32[1,16], index: 6, kind: input, shape index: {}]   ;;  %s694_s7 = inlined_call_operand.hbm [shape: f32[16,16], index: 7, kind: output, shape index: {}]  }
   0x1   :  { %13 = vsyncpa [#allocation4], 0  ;;  %s528_s24 = smov [#allocation2]   ;;  %s480_s28 = scalar_lea.hbm %s688_s1, 256 }
   0x2   :  { %s21_s25 = sshll.u32 %s528_s24, 4  ;;  %p481_p0 = scmp.ne.s32.totalorder %s688_s1, %s480_s28  ;;  %s22_s25 = int_to_ptr.vmem [resolvable:$true] %s21_s25 }
   0x3   :  { %p484_p1 = scmp.lt.u32.totalorder %s480_s28, %s688_s1 }
   0x5   :  { %p486_p2 = pnand %p484_p1, %p481_p0 }
   0x7   :  { %489 = shalt.err (!%p486_p2)
}
   0x8   :  { %s490_s10 = scalar_lea.vmem %s22_s25, 256  ;;  %p495_p4 = scmp.lt.s32.totalorder %s22_s25, %s22_s25 }
   0x9   :  { %p491_p3 = scmp.ne.s32.totalorder %s22_s25, %s490_s10  ;;  %p496_p5 = scmp.lt.s32.totalorder %s490_s10, %s490_s10 }
   0xb   :  { %p497_p6 = por %p496_p5, %p495_p4 }
   0xd   :  { %p498_p7 = pnand %p497_p6, %p491_p3 }
   0xf   :  { %501 = shalt.err (!%p498_p7)
}
  0x10   :  { %s529_s11 = smov 64   ;;  %s530_s12 = smov 4  }
  0x11   :  { %27 = dma.hbm_to_vmem [thread:$0]  %s688_s1, 256, %s22_s25, [#allocation3], %s529_s11, %s529_s11, %s530_s12  }
  0x12   :  { %524 = dma.done.wait [#allocation3], 256  }
  0x13   :  { %525 = vsyncadd [#allocation3], 4294967040  ;;  %v531_v0 = vmov 0.0   ;;  %vm532_vm0 = vmmov 0   ;;  %v462_v1 = vld [vmem:[#allocation2] sm:$0xff]   ;;  %v463_v2 = vld [vmem:[#allocation2 + $0x8] sm:$0xff]  }
  0x14   :  { %406 = vmatprep.subr.bf16.mxu0 %v531_v0  ;;  %410 = vmatprep.mubr.msk.bf16.mxu0 %vm532_vm0, %v531_v0  ;;  %v42_v3 = vld [vmem:[%s687_s0] sm:$0xff]  ;;  %v43_v4 = vld [vmem:[%s687_s0 + $0x8] sm:$0xff]  ;;  %vm68_vm1 = vcmask 261120   ;;  %v466_v8 = vld [vmem:[%s690_s3 + $0x10] sm:$0xff]   ;;  %vm343_vm2 = vcmask 130048  }
  0x15   :  { %414 = vmatprep.subr.bf16.mxu1 %v531_v0  ;;  %430 = vmatprep.mubr.msk.bf16.mxu1 %vm532_vm0, %v531_v0  ;;  %v464_v5 = vld [vmem:[%s690_s3] sm:$0xff]   ;;  %v49_v6 = vpack.c.bf16 %v43_v4, %v42_v3  ;;  %v465_v7 = vld [vmem:[%s690_s3 + $0x8] sm:$0xff]   ;;  %v467_v9 = vld [vmem:[%s690_s3 + $0x18] sm:$0xff]  }
  0x16   :  { %407 = vmatpush3.bf16.msra.mxu0 %v462_v1  ;;  %415 = vmatpush3.bf16.msra.mxu1 %v464_v5  ;;  %v468_v10 = vld [vmem:[%s690_s3 + $0x20] sm:$0xff]   ;;  %v469_v11 = vld [vmem:[%s690_s3 + $0x28] sm:$0xff]   ;;  %v470_v12 = vld [vmem:[%s690_s3 + $0x30] sm:$0xff]  }
  0x17   :  { %408 = vmatprep.subr.bf16.mxu0 %v531_v0  ;;  %416 = vmatprep.subr.bf16.mxu1 %v531_v0  ;;  %v471_v13 = vld [vmem:[%s690_s3 + $0x38] sm:$0xff]   ;;  %v472_v14 = vld [vmem:[%s692_s5] sm:$0xff]   ;;  %v473_v15 = vld [vmem:[%s692_s5 + $0x8] sm:$0xff]  }
  0x18   :  { %v474_v16 = vld [vmem:[%s692_s5 + $0x10] sm:$0xff]   ;;  %v475_v17 = vld [vmem:[%s692_s5 + $0x18] sm:$0xff]   ;;  %v476_v18 = vld [vmem:[%s692_s5 + $0x20] sm:$0xff]  }
  0x19   :  { %v477_v19 = vld [vmem:[%s692_s5 + $0x28] sm:$0xff]   ;;  %v363_v20 = vld [vmem:[%s689_s2] ss:$0 sm:$0xff]  ;;  %v478_v30 = vld [vmem:[%s692_s5 + $0x30] sm:$0xff]  }
  0x1a   :  { %409 = vmatpush3.bf16.msra.mxu0 %v463_v2  ;;  %417 = vmatpush3.bf16.msra.mxu1 %v465_v7  ;;  %v479_v31 = vld [vmem:[%s692_s5 + $0x38] sm:$0xff]   ;;  %v367_v32 = vld [vmem:[%s691_s4] ss:$0 sm:$0xff]  ;;  %s533_s5 = smov [#allocation5]  }
  0x1b   :  { %434 = vmatprep.subr.bf16.mxu0 %v531_v0  ;;  %418 = vmatprep.subr.bf16.mxu1 %v531_v0  ;;  %v376_v42 = vld [vmem:[%s693_s6] ss:$0 sm:$0xff]  ;;  %s351_s28 = sshll.u32 %s533_s5, 4  ;;  %s352_s28 = int_to_ptr.vmem [resolvable:$true] %s351_s28 }
  0x1c   :  { %s502_s4 = scalar_lea.vmem %s352_s28, 256  ;;  %p507_p9 = scmp.lt.s32.totalorder %s352_s28, %s352_s28 }
  0x1d   :  { %411 = vmatmul.mubr.msk.bf16.vlgmr.msra.gmra.mrb[0].mxu0 %vm68_vm1, %v49_v6  ;;  %p503_p8 = scmp.ne.s32.totalorder %s352_s28, %s502_s4  ;;  %p508_p10 = scmp.lt.s32.totalorder %s502_s4, %s502_s4 }
  0x1e   :  { %450 = vmatprep.mubr.msk.bf16.mxu0 %vm532_vm0, %v531_v0  ;;  %419 = vmatpush3.bf16.msra.mxu1 %v466_v8 }
  0x1f   :  { %420 = vmatprep.subr.bf16.mxu1 %v531_v0  ;;  %435 = vmatpush3.bf16.msra.mxu0 %v472_v14  ;;  %p509_p11 = por %p508_p10, %p507_p9 }
  0x20   :  { %436 = vmatprep.subr.bf16.mxu0 %v531_v0 }
  0x21   :  { %p510_p12 = pnand %p509_p11, %p503_p8 }
  0x22   :  { %421 = vmatpush3.bf16.msra.mxu1 %v467_v9 }
  0x23   :  { %422 = vmatprep.subr.bf16.mxu1 %v531_v0  ;;  %437 = vmatpush3.bf16.msra.mxu0 %v473_v15 }
  0x24   :  { %438 = vmatprep.subr.bf16.mxu0 %v531_v0 }
  0x26   :  { %423 = vmatpush3.bf16.msra.mxu1 %v468_v10 }
  0x27   :  { %424 = vmatprep.subr.bf16.mxu1 %v531_v0  ;;  %439 = vmatpush3.bf16.msra.mxu0 %v474_v16 }
  0x28   :  { %440 = vmatprep.subr.bf16.mxu0 %v531_v0 }
  0x2a   :  { %425 = vmatpush3.bf16.msra.mxu1 %v469_v11 }
  0x2b   :  { %426 = vmatprep.subr.bf16.mxu1 %v531_v0  ;;  %441 = vmatpush3.bf16.msra.mxu0 %v475_v17 }
  0x2c   :  { %442 = vmatprep.subr.bf16.mxu0 %v531_v0 }
  0x2e   :  { %427 = vmatpush3.bf16.msra.mxu1 %v470_v12 }
  0x2f   :  { %428 = vmatprep.subr.bf16.mxu1 %v531_v0  ;;  %443 = vmatpush3.bf16.msra.mxu0 %v476_v18 }
  0x30   :  { %444 = vmatprep.subr.bf16.mxu0 %v531_v0 }
  0x32   :  { %429 = vmatpush3.bf16.msra.mxu1 %v471_v13 }
  0x33   :  { %445 = vmatpush3.bf16.msra.mxu0 %v477_v19 }
  0x34   :  { %446 = vmatprep.subr.bf16.mxu0 %v531_v0 }
  0x37   :  { %447 = vmatpush3.bf16.msra.mxu0 %v478_v30 }
  0x38   :  { %448 = vmatprep.subr.bf16.mxu0 %v531_v0 }
  0x3b   :  { %449 = vmatpush3.bf16.msra.mxu0 %v479_v31 }
  0xf0   :  { %v106_v21 = vpop.f32.mrb[0].mxu0 }
  0xf1   :  { %v107_v22 = vadd.f32 %v363_v20, %v106_v21  ;;  %v412_v23 = vpop.f32.mrb[1].mxu0 }
  0xf2   :  { %v109_v24 = vpop.f32.mrb[2].mxu0 }
  0xf3   :  { %v110_v25 = vadd.f32 %v363_v20, %v109_v24  ;;  %v413_v26 = vpop.f32.mrb[3].mxu0  ;;  %v113_v27 = vmax.f32 %v107_v22, 0.0 }
  0xf5   :  { %v114_v28 = vmax.f32 %v110_v25, 0.0 }
  0xf7   :  { %v132_v29 = vpack.c.bf16 %v114_v28, %v113_v27 }
  0xf9   :  { %431 = vmatmul.mubr.bf16.vlgmr.msra.gmra.mrb[0].mxu1 %v132_v29 }
 0x1cc   :  { %v221_v33 = vpop.f32.mrb[0].mxu1 }
 0x1cd   :  { %v222_v34 = vadd.f32 %v367_v32, %v221_v33  ;;  %v432_v35 = vpop.f32.mrb[1].mxu1 }
 0x1ce   :  { %v224_v36 = vpop.f32.mrb[2].mxu1 }
 0x1cf   :  { %v225_v37 = vadd.f32 %v367_v32, %v224_v36  ;;  %v433_v38 = vpop.f32.mrb[3].mxu1  ;;  %v228_v39 = vmax.f32 %v222_v34, 0.0 }
 0x1d1   :  { %v229_v40 = vmax.f32 %v225_v37, 0.0 }
 0x1d3   :  { %v247_v41 = vpack.c.bf16 %v229_v40, %v228_v39 }
 0x1d5   :  { %451 = vmatmul.mubr.bf16.vlgmr.msra.gmra.mrb[4].mxu0 %v247_v41 }
 0x2a8   :  { %v336_v43 = vpop.f32.mrb[4].mxu0 }
 0x2a9   :  { %v337_v44 = vadd.f32 %v376_v42, %v336_v43  ;;  %v452_v45 = vpop.f32.mrb[5].mxu0 }
 0x2aa   :  { %v339_v46 = vpop.f32.mrb[6].mxu0 }
 0x2ab   :  { %344 = vst.msk [vmem:[#allocation5] sm:$0xff] %vm343_vm2, %v337_v44  ;;  %v340_v47 = vadd.f32 %v376_v42, %v339_v46  ;;  %v453_v48 = vpop.f32.mrb[7].mxu0 }
 0x2ad   :  { %345 = vst.msk [vmem:[#allocation5 + $0x8] sm:$0xff] %vm343_vm2, %v340_v47 }
 0x2ae   :  { %513 = shalt.err (!%p510_p12)
}
 0x2af   :  { %s514_s30 = scalar_lea.hbm %s694_s7, 256 }
 0x2b0   :  { %p515_p13 = scmp.ne.s32.totalorder %s694_s7, %s514_s30  ;;  %p518_p0 = scmp.lt.u32.totalorder %s514_s30, %s694_s7 }
 0x2b2   :  { %p520_p1 = pnand %p518_p0, %p515_p13 }
 0x2b4   :  { %523 = shalt.err (!%p520_p1)
}
 0x2b5   :  { %s534_s12 = smov 128   ;;  %s535_s13 = smov 8  }
 0x2b6   :  { %357 = dma.vmem_to_hbm [thread:$0]  %s352_s28, 256, %s694_s7, [#allocation4], %s534_s12, %s534_s12, %s535_s13  }
 0x2b7   :  { %526 = dma.done.wait [#allocation4], 256  }
 0x2b8   :  { %527 = vsyncadd [#allocation4], 4294967040 }
 0x2b9   :  { %361 = vsyncpa [#allocation3], 1 }
 0x2ba   :  { %362 = vsyncpa [#allocation4], 1 }

</bundles_post_ra>
